<compile_context>
chip_gen: v6e
topology: v6e:2x2x1
jax: 0.10.0
libtpu: 0.0.40
codegen_flags: <defaults>
</compile_context>

<pallas_src>
import jax
import jax.numpy as jnp
from jax import lax
from jax.experimental import pallas as pl
from jax.experimental.pallas import tpu as pltpu

L_PAD = 128       # lane-padded sequence length (one vreg row per sequence)
B_BLK_MAX = 128   # sequences per grid step
EPS = 1e-7


def _round_up(x: int, m: int) -> int:
    return ((x + m - 1) // m) * m


def _make_kernel(n_on: int, n_dur: int, b_blk: int):
    """Kernel specialized for static sequence lengths (masks/recips baked in)."""
    inv_on = float(1.0 / n_on)
    has_dur = n_dur >= 2
    inv_r = float(1.0 / (n_dur - 1)) if has_dur else 0.0

    def _beat_loss(on_ref, lane):
        onset = on_ref[...]                                  # (b_blk, 128) f32
        m = jnp.mod(onset, 4.0)                              # beat position in [0, 4)
        # beat_weights = [1.0, 0.5, 0.75, 0.5] gather via VALU select chain
        # (m in [k, k+1) <=> (onset % 4).long() == k for non-negative mod).
        w = jnp.where(m < 1.0, 1.0,
            jnp.where(m < 2.0, 0.5,
            jnp.where(m < 3.0, 0.75, 0.5)))
        on_mask = (lane < n_on).astype(jnp.float32)          # (1, 128) static mask
        mean_w = jnp.sum(w * on_mask, axis=-1) * inv_on      # (b_blk,)  XLU reduce
        return jnp.nan_to_num(1.0 - mean_w, nan=0.0)

    if has_dur:
        def kernel(on_ref, dur_ref, durn_ref, out_ref):
            lane = lax.broadcasted_iota(jnp.int32, (1, L_PAD), 1)
            beat = _beat_loss(on_ref, lane)

            d_prev = dur_ref[...] + EPS                      # durations[:-1] + eps
            d_next = durn_ref[...] + EPS                     # durations[1:]  + eps
            # EUP reciprocal instead of a VALU divide sequence.
            ratio = d_next * pl.reciprocal(d_prev, approx=True)
            ratio = jnp.nan_to_num(ratio, nan=0.0, posinf=0.0, neginf=0.0)
            r_mask = (lane < (n_dur - 1)).astype(jnp.float32)
            rm = ratio * r_mask
            # Fused single-pass mean/variance: two back-to-back XLU reductions.
            s1 = jnp.sum(rm, axis=-1)                        # (b_blk,)
            s2 = jnp.sum(rm * ratio, axis=-1)                # (b_blk,)
            mean_r = s1 * inv_r
            var = jnp.maximum(s2 * inv_r - mean_r * mean_r, 0.0)  # clamp cancellation
            dur_loss = jnp.tanh(jnp.nan_to_num(var, nan=0.0))     # EUP tanh

            total = jnp.nan_to_num(beat + 0.5 * dur_loss, nan=0.0)
            # Lane-dense, fully (8,128)-aligned store (row replicated on sublanes).
            out_ref[...] = jnp.broadcast_to(total[None, None, :], (1, 8, b_blk))
    else:
        def kernel(on_ref, out_ref):
            lane = lax.broadcasted_iota(jnp.int32, (1, L_PAD), 1)
            total = jnp.nan_to_num(_beat_loss(on_ref, lane), nan=0.0)
            out_ref[...] = jnp.broadcast_to(total[None, None, :], (1, 8, b_blk))

    return kernel


def rhythm_consistency_loss_batched(onset_times, durations):
    """Per-sequence RhythmConsistencyLoss over a batch.

    onset_times: (B, n_on) f32, durations: (B, n_dur) f32 (shared static lengths).
    Returns (B,) f32 losses.
    """
    onset_times = jnp.asarray(onset_times, jnp.float32)
    durations = jnp.asarray(durations, jnp.float32)
    B = int(onset_times.shape[0])
    n_on = int(onset_times.shape[1])
    n_dur = int(durations.shape[1])

    if B == 0:
        return jnp.zeros((0,), jnp.float32)
    if n_on == 0:                                   # module: empty onsets -> 0.0
        return jnp.zeros((B,), jnp.float32)
    if n_on > L_PAD or n_dur > L_PAD:
        # TODO(synk): tile longer sequences over a second ("arbitrary") lane-grid axis.
        raise ValueError(f"sequence length > {L_PAD} not supported")

    has_dur = n_dur >= 2
    b_blk = min(_round_up(B, 8), B_BLK_MAX)
    b_pad = _round_up(B, b_blk)
    nb = b_pad // b_blk

    def pad2d(x, n_valid):                          # one cheap pad per slab
        return jnp.pad(x, ((0, b_pad - B), (0, L_PAD - n_valid)))

    on_slab = pad2d(onset_times, n_on)              # (b_pad, 128)
    inputs = [on_slab]
    in_spec = pl.BlockSpec((b_blk, L_PAD), lambda i: (i, 0))
    in_specs = [in_spec]
    if has_dur:
        inputs.append(pad2d(durations, n_dur))                 # durations[:-1] source
        inputs.append(pad2d(durations[:, 1:], n_dur - 1))      # durations[1:]  source
        in_specs += [in_spec, in_spec]

    kernel = _make_kernel(n_on, n_dur, b_blk)
    out = pl.pallas_call(
        kernel,
        out_shape=jax.ShapeDtypeStruct((nb, 8, b_blk), jnp.float32),
        grid=(nb,),
        in_specs=in_specs,
        out_specs=pl.BlockSpec((1, 8, b_blk), lambda i: (i, 0, 0)),
        compiler_params=pltpu.CompilerParams(
            dimension_semantics=("parallel",)),     # shards batch over TCs on v7x
    )(*inputs)
    return out[:, 0, :].reshape(-1)[:B]


def rhythm_consistency_loss(onset_times, durations):
    """JAX/Pallas equivalent of RhythmConsistencyLoss.forward((onsets, durations))."""
    onset_times = jnp.asarray(onset_times, jnp.float32)
    durations = jnp.asarray(durations, jnp.float32)
    if int(onset_times.shape[0]) == 0:              # static (shape-level) early exit
        return jnp.zeros((), jnp.float32)
    return rhythm_consistency_loss_batched(onset_times[None, :], durations[None, :])[0]


def _reference_loss(onset_times, durations):
    """Pure-JAX reference mirroring the PyTorch module."""
    bw = jnp.array([1.0, 0.5, 0.75, 0.5], jnp.float32)
    pos = jnp.clip(jnp.floor(jnp.mod(onset_times, 4.0)).astype(jnp.int32), 0, 3)
    w = bw[pos]
    beat = jnp.nan_to_num(1.0 - jnp.mean(w), nan=0.0)
    if int(durations.shape[0]) < 2:
        dl = jnp.float32(0.0)
    else:
        d = durations + EPS
        r = d[1:] / d[:-1]
        r = jnp.nan_to_num(r, nan=0.0, posinf=0.0, neginf=0.0)
        var = jnp.mean((r - jnp.mean(r)) ** 2)      # mean of squared diffs (population)
        dl = jnp.tanh(jnp.nan_to_num(var, nan=0.0))
    return jnp.nan_to_num(beat + 0.5 * dl, nan=0.0)


if __name__ == "__main__":
    key = jax.random.PRNGKey(0)
    k1, k2, k3, k4 = jax.random.split(key, 4)
    seq = 8

    # Single-sequence (module semantics).
    onset_times = jax.random.uniform(k1, (seq,), jnp.float32, 0.0, 8.0)
    durations = jax.random.uniform(k2, (seq,), jnp.float32, 0.5, 1.5)
    out = jax.block_until_ready(rhythm_consistency_loss(onset_times, durations))
    ref = _reference_loss(onset_times, durations)
    # Tolerance accounts for pl.reciprocal(approx=True) (~1e-4 rel) and the
    # fused sum/sum-of-squares variance; approx=False restores ~1e-6 agreement.
    assert jnp.allclose(out, ref, atol=3e-3, rtol=3e-3), (out, ref)

    # Small batched check (same kernel, amortized pallas_call overhead).
    B = 3
    on_b = jax.random.uniform(k3, (B, seq), jnp.float32, 0.0, 8.0)
    dur_b = jax.random.uniform(k4, (B, seq), jnp.float32, 0.5, 1.5)
    out_b = jax.block_until_ready(rhythm_consistency_loss_batched(on_b, dur_b))
    ref_b = jnp.stack([_reference_loss(on_b[i], dur_b[i]) for i in range(B)])
    assert jnp.allclose(out_b, ref_b, atol=3e-3, rtol=3e-3), (out_b, ref_b)

    print("KERNEL_OK")
</pallas_src>

<mosaic_0001>
module attributes {stable_mosaic.version = 11 : i64} {
  func.func @kernel(%arg0: i32, %arg1: memref<8x128xf32, #tpu.memory_space<vmem>>, %arg2: memref<8x128xf32, #tpu.memory_space<vmem>>, %arg3: memref<8x128xf32, #tpu.memory_space<vmem>>, %arg4: memref<1x8x8xf32, #tpu.memory_space<vmem>>) attributes {dimension_semantics = [#tpu.dimension_semantics<parallel>], iteration_bounds = array<i64: 1>, scalar_prefetch = 0 : i64, scratch_operands = 0 : i64, tpu.core_type = #tpu.core_type<tc>, window_params = [{transform_indices = @transform_0, window_bounds = array<i64: 8, 128>}, {transform_indices = @transform_1, window_bounds = array<i64: 8, 128>}, {transform_indices = @transform_2, window_bounds = array<i64: 8, 128>}, {transform_indices = @transform_3, window_bounds = array<i64: 1, 8, 8>}]} {
    %0 = tpu.iota {dimensions = array<i32: 1>} : vector<1x128xi32>
    %c0 = arith.constant 0 : index
    %c0_0 = arith.constant 0 : index
    %1 = vector.load %arg1[%c0, %c0_0] : memref<8x128xf32, #tpu.memory_space<vmem>>, vector<8x128xf32>
    %cst = arith.constant 4.000000e+00 : f32
    %2 = vector.broadcast %cst : f32 to vector<8x128xf32>
    %3 = arith.remf %1, %2 : vector<8x128xf32>
    %cst_1 = arith.constant 0.000000e+00 : f32
    %4 = vector.broadcast %cst_1 : f32 to vector<8x128xf32>
    %5 = arith.cmpf one, %3, %4 : vector<8x128xf32>
    %cst_2 = arith.constant 0.000000e+00 : f32
    %6 = vector.broadcast %cst_2 : f32 to vector<8x128xf32>
    %7 = arith.cmpf olt, %3, %6 : vector<8x128xf32>
    %cst_3 = arith.constant 0.000000e+00 : f32
    %8 = arith.cmpf olt, %cst, %cst_3 : f32
    %9 = vector.broadcast %8 : i1 to vector<8x128xi1>
    %10 = vector.broadcast %9 : vector<8x128xi1> to vector<8x128xi1>
    %11 = arith.xori %7, %10 : vector<8x128xi1>
    %12 = arith.andi %11, %5 : vector<8x128xi1>
    %13 = vector.broadcast %cst : f32 to vector<8x128xf32>
    %14 = arith.addf %3, %13 : vector<8x128xf32>
    %15 = arith.select %12, %14, %3 : vector<8x128xi1>, vector<8x128xf32>
    %cst_4 = arith.constant 1.000000e+00 : f32
    %16 = vector.broadcast %cst_4 : f32 to vector<8x128xf32>
    %17 = arith.cmpf olt, %15, %16 : vector<8x128xf32>
    %cst_5 = arith.constant 2.000000e+00 : f32
    %18 = vector.broadcast %cst_5 : f32 to vector<8x128xf32>
    %19 = arith.cmpf olt, %15, %18 : vector<8x128xf32>
    %cst_6 = arith.constant 3.000000e+00 : f32
    %20 = vector.broadcast %cst_6 : f32 to vector<8x128xf32>
    %21 = arith.cmpf olt, %15, %20 : vector<8x128xf32>
    %cst_7 = arith.constant 7.500000e-01 : f32
    %cst_8 = arith.constant 5.000000e-01 : f32
    %22 = vector.broadcast %cst_7 : f32 to vector<8x128xf32>
    %23 = vector.broadcast %cst_8 : f32 to vector<8x128xf32>
    %24 = arith.select %21, %22, %23 : vector<8x128xi1>, vector<8x128xf32>
    %cst_9 = arith.constant 5.000000e-01 : f32
    %25 = vector.broadcast %cst_9 : f32 to vector<8x128xf32>
    %26 = arith.select %19, %25, %24 : vector<8x128xi1>, vector<8x128xf32>
    %cst_10 = arith.constant 1.000000e+00 : f32
    %27 = vector.broadcast %cst_10 : f32 to vector<8x128xf32>
    %28 = arith.select %17, %27, %26 : vector<8x128xi1>, vector<8x128xf32>
    %c8_i32 = arith.constant 8 : i32
    %29 = vector.broadcast %c8_i32 : i32 to vector<1x128xi32>
    %30 = arith.cmpi slt, %0, %29 : vector<1x128xi32>
    %31 = arith.extui %30 : vector<1x128xi1> to vector<1x128xi32>
    %32 = arith.sitofp %31 : vector<1x128xi32> to vector<1x128xf32>
    %33 = vector.broadcast %32 : vector<1x128xf32> to vector<8x128xf32>
    %34 = arith.mulf %28, %33 : vector<8x128xf32>
    %cst_11 = arith.constant dense<0.000000e+00> : vector<8xf32>
    %35 = vector.multi_reduction <add>, %34, %cst_11 [1] : vector<8x128xf32> to vector<8xf32>
    %cst_12 = arith.constant 1.250000e-01 : f32
    %36 = vector.broadcast %cst_12 : f32 to vector<8xf32>
    %37 = arith.mulf %35, %36 : vector<8xf32>
    %cst_13 = arith.constant 1.000000e+00 : f32
    %38 = vector.broadcast %cst_13 : f32 to vector<8xf32>
    %39 = arith.subf %38, %37 : vector<8xf32>
    %cst_14 = arith.constant 0.000000e+00 : f32
    %40 = arith.cmpf one, %39, %39 : vector<8xf32>
    %41 = vector.broadcast %cst_14 : f32 to vector<8xf32>
    %42 = arith.select %40, %41, %39 : vector<8xi1>, vector<8xf32>
    %cst_15 = arith.constant 0x7F800000 : f32
    %43 = vector.broadcast %cst_15 : f32 to vector<8xf32>
    %44 = arith.cmpf oeq, %42, %43 : vector<8xf32>
    %cst_16 = arith.constant 3.40282347E+38 : f32
    %45 = vector.broadcast %cst_16 : f32 to vector<8xf32>
    %46 = arith.select %44, %45, %42 : vector<8xi1>, vector<8xf32>
    %cst_17 = arith.constant 0xFF800000 : f32
    %47 = vector.broadcast %cst_17 : f32 to vector<8xf32>
    %48 = arith.cmpf oeq, %46, %47 : vector<8xf32>
    %cst_18 = arith.constant -3.40282347E+38 : f32
    %49 = vector.broadcast %cst_18 : f32 to vector<8xf32>
    %50 = arith.select %48, %49, %46 : vector<8xi1>, vector<8xf32>
    %c0_19 = arith.constant 0 : index
    %c0_20 = arith.constant 0 : index
    %51 = vector.load %arg2[%c0_19, %c0_20] : memref<8x128xf32, #tpu.memory_space<vmem>>, vector<8x128xf32>
    %cst_21 = arith.constant 1.000000e-07 : f32
    %52 = vector.broadcast %cst_21 : f32 to vector<8x128xf32>
    %53 = arith.addf %51, %52 : vector<8x128xf32>
    %c0_22 = arith.constant 0 : index
    %c0_23 = arith.constant 0 : index
    %54 = vector.load %arg3[%c0_22, %c0_23] : memref<8x128xf32, #tpu.memory_space<vmem>>, vector<8x128xf32>
    %cst_24 = arith.constant 1.000000e-07 : f32
    %55 = vector.broadcast %cst_24 : f32 to vector<8x128xf32>
    %56 = arith.addf %54, %55 : vector<8x128xf32>
    %57 = tpu.reciprocal %53 {approx = true} : vector<8x128xf32> -> vector<8x128xf32>
    %58 = arith.mulf %56, %57 : vector<8x128xf32>
    %cst_25 = arith.constant 0.000000e+00 : f32
    %cst_26 = arith.constant 0.000000e+00 : f32
    %cst_27 = arith.constant 0.000000e+00 : f32
    %59 = arith.cmpf one, %58, %58 : vector<8x128xf32>
    %60 = vector.broadcast %cst_25 : f32 to vector<8x128xf32>
    %61 = arith.select %59, %60, %58 : vector<8x128xi1>, vector<8x128xf32>
    %cst_28 = arith.constant 0x7F800000 : f32
    %62 = vector.broadcast %cst_28 : f32 to vector<8x128xf32>
    %63 = arith.cmpf oeq, %61, %62 : vector<8x128xf32>
    %64 = vector.broadcast %cst_27 : f32 to vector<8x128xf32>
    %65 = arith.select %63, %64, %61 : vector<8x128xi1>, vector<8x128xf32>
    %cst_29 = arith.constant 0xFF800000 : f32
    %66 = vector.broadcast %cst_29 : f32 to vector<8x128xf32>
    %67 = arith.cmpf oeq, %65, %66 : vector<8x128xf32>
    %68 = vector.broadcast %cst_26 : f32 to vector<8x128xf32>
    %69 = arith.select %67, %68, %65 : vector<8x128xi1>, vector<8x128xf32>
    %c7_i32 = arith.constant 7 : i32
    %70 = vector.broadcast %c7_i32 : i32 to vector<1x128xi32>
    %71 = arith.cmpi slt, %0, %70 : vector<1x128xi32>
    %72 = arith.extui %71 : vector<1x128xi1> to vector<1x128xi32>
    %73 = arith.sitofp %72 : vector<1x128xi32> to vector<1x128xf32>
    %74 = vector.broadcast %73 : vector<1x128xf32> to vector<8x128xf32>
    %75 = arith.mulf %69, %74 : vector<8x128xf32>
    %cst_30 = arith.constant dense<0.000000e+00> : vector<8xf32>
    %76 = vector.multi_reduction <add>, %75, %cst_30 [1] : vector<8x128xf32> to vector<8xf32>
    %77 = arith.mulf %75, %69 : vector<8x128xf32>
    %cst_31 = arith.constant dense<0.000000e+00> : vector<8xf32>
    %78 = vector.multi_reduction <add>, %77, %cst_31 [1] : vector<8x128xf32> to vector<8xf32>
    %cst_32 = arith.constant 0.142857149 : f32
    %79 = vector.broadcast %cst_32 : f32 to vector<8xf32>
    %80 = arith.mulf %76, %79 : vector<8xf32>
    %cst_33 = arith.constant 0.142857149 : f32
    %81 = vector.broadcast %cst_33 : f32 to vector<8xf32>
    %82 = arith.mulf %78, %81 : vector<8xf32>
    %83 = arith.mulf %80, %80 : vector<8xf32>
    %84 = arith.subf %82, %83 : vector<8xf32>
    %cst_34 = arith.constant 0.000000e+00 : f32
    %85 = vector.broadcast %cst_34 : f32 to vector<8xf32>
    %86 = arith.maximumf %84, %85 : vector<8xf32>
    %cst_35 = arith.constant 0.000000e+00 : f32
    %87 = arith.cmpf one, %86, %86 : vector<8xf32>
    %88 = vector.broadcast %cst_35 : f32 to vector<8xf32>
    %89 = arith.select %87, %88, %86 : vector<8xi1>, vector<8xf32>
    %cst_36 = arith.constant 0x7F800000 : f32
    %90 = vector.broadcast %cst_36 : f32 to vector<8xf32>
    %91 = arith.cmpf oeq, %89, %90 : vector<8xf32>
    %cst_37 = arith.constant 3.40282347E+38 : f32
    %92 = vector.broadcast %cst_37 : f32 to vector<8xf32>
    %93 = arith.select %91, %92, %89 : vector<8xi1>, vector<8xf32>
    %cst_38 = arith.constant 0xFF800000 : f32
    %94 = vector.broadcast %cst_38 : f32 to vector<8xf32>
    %95 = arith.cmpf oeq, %93, %94 : vector<8xf32>
    %cst_39 = arith.constant -3.40282347E+38 : f32
    %96 = vector.broadcast %cst_39 : f32 to vector<8xf32>
    %97 = arith.select %95, %96, %93 : vector<8xi1>, vector<8xf32>
    %98 = math.tanh %97 : vector<8xf32>
    %cst_40 = arith.constant 5.000000e-01 : f32
    %99 = vector.broadcast %cst_40 : f32 to vector<8xf32>
    %100 = arith.mulf %99, %98 : vector<8xf32>
    %101 = arith.addf %50, %100 : vector<8xf32>
    %cst_41 = arith.constant 0.000000e+00 : f32
    %102 = arith.cmpf one, %101, %101 : vector<8xf32>
    %103 = vector.broadcast %cst_41 : f32 to vector<8xf32>
    %104 = arith.select %102, %103, %101 : vector<8xi1>, vector<8xf32>
    %cst_42 = arith.constant 0x7F800000 : f32
    %105 = vector.broadcast %cst_42 : f32 to vector<8xf32>
    %106 = arith.cmpf oeq, %104, %105 : vector<8xf32>
    %cst_43 = arith.constant 3.40282347E+38 : f32
    %107 = vector.broadcast %cst_43 : f32 to vector<8xf32>
    %108 = arith.select %106, %107, %104 : vector<8xi1>, vector<8xf32>
    %cst_44 = arith.constant 0xFF800000 : f32
    %109 = vector.broadcast %cst_44 : f32 to vector<8xf32>
    %110 = arith.cmpf oeq, %108, %109 : vector<8xf32>
    %cst_45 = arith.constant -3.40282347E+38 : f32
    %111 = vector.broadcast %cst_45 : f32 to vector<8xf32>
    %112 = arith.select %110, %111, %108 : vector<8xi1>, vector<8xf32>
    %113 = vector.shape_cast %112 : vector<8xf32> to vector<1x1x8xf32>
    %114 = vector.shape_cast %113 : vector<1x1x8xf32> to vector<1x1x8xf32>
    %115 = vector.broadcast %114 : vector<1x1x8xf32> to vector<1x8x8xf32>
    %c0_46 = arith.constant 0 : index
    %c0_47 = arith.constant 0 : index
    %c0_48 = arith.constant 0 : index
    %116 = vector.load %arg4[%c0_46, %c0_47, %c0_48] : memref<1x8x8xf32, #tpu.memory_space<vmem>>, vector<1x8x8xf32>
    tpu.vector_store %arg4[%c0_46, %c0_47, %c0_48], %115 {strides = array<i32>} : memref<1x8x8xf32, #tpu.memory_space<vmem>>, vector<1x8x8xf32>,
    return
  }
  func.func @transform_0(%arg0: i32) -> (i32, i32) {
    %c0_i32 = arith.constant 0 : i32
    %c0_i32_0 = arith.constant 0 : i32
    return %arg0, %c0_i32 : i32, i32
  }
  func.func @transform_1(%arg0: i32) -> (i32, i32) {
    %c0_i32 = arith.constant 0 : i32
    %c0_i32_0 = arith.constant 0 : i32
    return %arg0, %c0_i32 : i32, i32
  }
  func.func @transform_2(%arg0: i32) -> (i32, i32) {
    %c0_i32 = arith.constant 0 : i32
    %c0_i32_0 = arith.constant 0 : i32
    return %arg0, %c0_i32 : i32, i32
  }
  func.func @transform_3(%arg0: i32) -> (i32, i32, i32) {
    %c0_i32 = arith.constant 0 : i32
    %c0_i32_0 = arith.constant 0 : i32
    %c0_i32_1 = arith.constant 0 : i32
    return %arg0, %c0_i32, %c0_i32_0 : i32, i32, i32
  }
}

</mosaic_0001>

<bundles_post_ra>
// kernel: tpu_custom_call.1
= control target key start
LH: loop header
LB: loop body
LE: loop exit
PB: predicated region body
PF: predicated region fallthrough
CT: control target
= control target key end

     0   :  { %8 = vsyncpa [#allocation3], 0  ;;  %s309_s0 = inlined_call_operand.hbm [shape: f32[8,128], index: 0, kind: input, shape index: {}]   ;;  %s310_s1 = inlined_call_operand.hbm [shape: f32[8,128], index: 1, kind: input, shape index: {}]   ;;  %s311_s2 = inlined_call_operand.hbm [shape: f32[8,128], index: 2, kind: input, shape index: {}]   ;;  %s312_s3 = inlined_call_operand.hbm [shape: f32[1,8,8], index: 3, kind: output, shape index: {}]  }
   0x1   :  { %9 = vsyncpa [#allocation6], 0 }
   0x2   :  { %10 = vsyncpa [#allocation4], 0  ;;  %s264_s12 = smov [#allocation5]   ;;  %s265_s14 = smov [#allocation2]  }
   0x3   :  { %s27_s13 = sshll.u32 %s264_s12, 4  ;;  %s17_s15 = sshll.u32 %s265_s14, 4  ;;  %s28_s13 = int_to_ptr.vmem [resolvable:$true] %s27_s13  ;;  %s18_s15 = int_to_ptr.vmem [resolvable:$true] %s17_s15 }
   0x4   :  { %s186_s16 = scalar_lea.vmem %s28_s13, 128  ;;  %p191_p1 = scmp.lt.s32.totalorder %s28_s13, %s28_s13 }
   0x5   :  { %p187_p0 = scmp.ne.s32.totalorder %s28_s13, %s186_s16  ;;  %p192_p2 = scmp.lt.s32.totalorder %s186_s16, %s186_s16 }
   0x7   :  { %p193_p3 = por %p192_p2, %p191_p1 }
   0x9   :  { %p194_p4 = pnand %p193_p3, %p187_p0 }
   0xb   :  { %197 = shalt.err (!%p194_p4)
}
   0xc   :  { %30 = dma.hbm_to_vmem [thread:$0]  %s310_s1, 128, %s28_s13, [#allocation6]  }
   0xd   :  { %s206_s19 = scalar_lea.vmem %s18_s15, 128  ;;  %p211_p6 = scmp.lt.s32.totalorder %s18_s15, %s18_s15 }
   0xe   :  { %p207_p5 = scmp.ne.s32.totalorder %s18_s15, %s206_s19  ;;  %p212_p7 = scmp.lt.s32.totalorder %s206_s19, %s206_s19 }
  0x10   :  { %p213_p8 = por %p212_p7, %p211_p6 }
  0x12   :  { %p214_p9 = pnand %p213_p8, %p207_p5 }
  0x14   :  { %217 = shalt.err (!%p214_p9)
}
  0x15   :  { %20 = dma.hbm_to_vmem [thread:$0]  %s309_s0, 128, %s18_s15, [#allocation3]  }
  0x16   :  { %s266_s22 = smov [#allocation7]  }
  0x17   :  { %s37_s23 = sshll.u32 %s266_s22, 4  ;;  %s38_s23 = int_to_ptr.vmem [resolvable:$true] %s37_s23 }
  0x18   :  { %s226_s24 = scalar_lea.vmem %s38_s23, 128  ;;  %p231_p11 = scmp.lt.s32.totalorder %s38_s23, %s38_s23 }
  0x19   :  { %p227_p10 = scmp.ne.s32.totalorder %s38_s23, %s226_s24  ;;  %p232_p12 = scmp.lt.s32.totalorder %s226_s24, %s226_s24 }
  0x1b   :  { %p233_p13 = por %p232_p12, %p231_p11 }
  0x1d   :  { %p234_p0 = pnand %p233_p13, %p227_p10 }
  0x1f   :  { %237 = shalt.err (!%p234_p0)
}
  0x20   :  { %40 = dma.hbm_to_vmem [thread:$0]  %s311_s2, 128, %s38_s23, [#allocation6]  }
  0x21   :  { %258 = dma.done.wait [#allocation3], 128  }
  0x22   :  { %259 = vsyncadd [#allocation3], 4294967168 }
  0x23   :  { %260 = dma.done.wait [#allocation6], 256  }
  0x24   :  { %261 = vsyncadd [#allocation6], 4294967040  ;;  %v89_v0 = vld [vmem:[#allocation5] sm:$0xff]  ;;  %v52_v1 = vld [vmem:[#allocation2] sm:$0xff]  ;;  %v50_v9 = vlaneseq  ;;  %v267_v21 = vmov 0.5   ;;  %v268_v23 = vmov 0.0  }
  0x25   :  { %v90_v2 = vadd.f32 1e-07, %v89_v0  ;;  %v53_v3 = vand.u32 2147483647, %v52_v1  ;;  %v91_v8 = vld [vmem:[#allocation7] sm:$0xff]  ;;  %v62_v10 = vand.u32 2147483648, %v52_v1 }
  0x26   :  { %v92_v12 = vadd.f32 1e-07, %v91_v8  ;;  %v300_v14 = vand.u32 127, %v50_v9  ;;  %v132_v52 = vshrl.u32 %v50_v9, 7  ;;  %s269_s0 = smov [#allocation8]  }
  0x27   :  { %174 = vrcp.f32 %v90_v2  ;;  %v55_v4 = vmul.f32 0.25, %v53_v3  ;;  %s156_s2 = sshll.u32 %s269_s0, 4  ;;  %s157_s2 = int_to_ptr.vmem [resolvable:$true] %s156_s2 }
  0x28   :  { %vm75_vm4 = vcmp.lt.s32.totalorder %v300_v14, 8  ;;  %vm101_vm6 = vcmp.lt.s32.totalorder %v300_v14, 7  ;;  %v133_v54 = vsub.s32 %v300_v14, %v132_v52  ;;  %s238_s26 = scalar_lea.vmem %s157_s2, 128  ;;  %p243_p2 = scmp.lt.s32.totalorder %s157_s2, %s157_s2 }
  0x29   :  { %v56_v5 = vfloor.f32 %v55_v4  ;;  %v166_v24 = vsel %vm75_vm4, 1.0, %v268_v23  ;;  %v167_v26 = vsel %vm101_vm6, 1.0, %v268_v23  ;;  %p239_p1 = scmp.ne.s32.totalorder %s157_s2, %s238_s26  ;;  %p244_p3 = scmp.lt.s32.totalorder %s238_s26, %s238_s26 }
  0x2b   :  { %v57_v6 = vmul.f32 4.0, %v56_v5  ;;  %p245_p4 = por %p244_p3, %p243_p2 }
  0x2d   :  { %v58_v7 = vsub.f32 %v53_v3, %v57_v6  ;;  %p246_p5 = pnand %p245_p4, %p239_p1 }
  0x2f   :  { %vm59_vm0 = vcmp.eq.f32.partialorder %v58_v7, 4.0 }
  0x30   :  { %v60_v11 = vsel %vm59_vm0, 0.0, %v58_v7 }
  0x31   :  { %v61_v13 = vand.u32 2147483647, %v60_v11 }
  0x33   :  { %v63_v15 = vor.u32 %v62_v10, %v61_v13 }
  0x34   :  { %v175_v16 = vpop.eup %174 }
  0x35   :  { %v94_v17 = vmul.f32 %v175_v16, %v92_v12  ;;  %vm64_vm1 = vcmp.ne.f32.partialorder %v63_v15, 0.0  ;;  %vm65_vm2 = vcmp.lt.f32.partialorder %v63_v15, 0.0  ;;  %v67_v18 = vadd.f32 4.0, %v63_v15 }
  0x36   :  { %vm66_vm3 = vmand %vm65_vm2, %vm64_vm1 }
  0x37   :  { %vm95_vm5 = vcmp.ne.f32.partialorder %v94_v17, %v94_v17  ;;  %v68_v19 = vsel %vm66_vm3, %v67_v18, %v63_v15 }
  0x38   :  { %v96_v20 = vsel %vm95_vm5, 0.0, %v94_v17  ;;  %vm69_vm7 = vcmp.lt.f32.partialorder %v68_v19, 1.0  ;;  %vm70_vm8 = vcmp.lt.f32.partialorder %v68_v19, 2.0  ;;  %vm71_vm9 = vcmp.lt.f32.partialorder %v68_v19, 3.0 }
  0x39   :  { %vm97_vm10 = vcmp.eq.f32.partialorder %v96_v20, inf  ;;  %v72_v22 = vsel %vm71_vm9, 0.75, %v267_v21  ;;  %vm148_vm5 = vcmask 64512  }
  0x3a   :  { %v98_v25 = vsel %vm97_vm10, 0.0, %v96_v20  ;;  %v73_v27 = vsel %vm70_vm8, 0.5, %v72_v22 }
  0x3b   :  { %vm99_vm11 = vcmp.eq.f32.partialorder %v98_v25, -inf  ;;  %v74_v28 = vsel %vm69_vm7, 1.0, %v73_v27 }
  0x3c   :  { %v100_v29 = vsel %vm99_vm11, 0.0, %v98_v25  ;;  %v78_v30 = vmul.f32 %v166_v24, %v74_v28 }
  0x3d   :  { %v104_v31 = vmul.f32 %v167_v26, %v100_v29 }
  0x3e   :  { %79 = vadd.xlane.f32.xlu1 %v78_v30 }
  0x3f   :  { %105 = vadd.xlane.f32.xlu0 %v104_v31  ;;  %v107_v32 = vmul.f32 %v104_v31, %v100_v29 }
  0x43   :  { %108 = vadd.xlane.f32.xlu0 %v107_v32 }
  0xc7   :  { %v80_v38 = vpop.xlane.xlu1 %79 }
  0xc8   :  { %v106_v33 = vpop.xlane.xlu0 %105  ;;  %v81_v41 = vmul.f32 0.125, %v80_v38 }
  0xc9   :  { %v110_v34 = vmul.f32 0.14285715, %v106_v33 }
  0xca   :  { %v82_v43 = vsub.f32 1.0, %v81_v41 }
  0xcb   :  { %v112_v36 = vmul.f32 %v110_v34, %v110_v34 }
  0xcc   :  { %v109_v35 = vpop.xlane.xlu0 %108  ;;  %vm83_vm15 = vcmp.ne.f32.partialorder %v82_v43, %v82_v43 }
  0xcd   :  { %v111_v37 = vmul.f32 0.14285715, %v109_v35  ;;  %v84_v46 = vsel %vm83_vm15, 0.0, %v82_v43 }
  0xce   :  { %vm85_vm0 = vcmp.eq.f32.partialorder %v84_v46, inf }
  0xcf   :  { %v113_v39 = vsub.f32 %v111_v37, %v112_v36  ;;  %v86_v47 = vsel %vm85_vm0, 3.4028235e+38, %v84_v46 }
  0xd0   :  { %vm87_vm1 = vcmp.eq.f32.partialorder %v86_v47, -inf }
  0xd1   :  { %v114_v40 = vmax.f32 %v113_v39, 0.0  ;;  %v88_v50 = vsel %vm87_vm1, -3.4028235e+38, %v86_v47 }
  0xd3   :  { %vm115_vm12 = vcmp.ne.f32.partialorder %v114_v40, %v114_v40 }
  0xd4   :  { %v116_v42 = vsel %vm115_vm12, 0.0, %v114_v40 }
  0xd5   :  { %vm117_vm13 = vcmp.eq.f32.partialorder %v116_v42, inf }
  0xd6   :  { %v118_v44 = vsel %vm117_vm13, 3.4028235e+38, %v116_v42 }
  0xd7   :  { %vm119_vm14 = vcmp.eq.f32.partialorder %v118_v44, -inf }
  0xd8   :  { %v120_v45 = vsel %vm119_vm14, -3.4028235e+38, %v118_v44 }
  0xd9   :  { %176 = vtanh.f32 %v120_v45 }
  0xe6   :  { %v177_v48 = vpop.eup %176 }
  0xe7   :  { %v122_v49 = vmul.f32 0.5, %v177_v48 }
  0xe9   :  { %v123_v51 = vadd.f32 %v122_v49, %v88_v50 }
  0xeb   :  { %vm124_vm2 = vcmp.ne.f32.partialorder %v123_v51, %v123_v51 }
  0xec   :  { %v125_v53 = vsel %vm124_vm2, 0.0, %v123_v51 }
  0xed   :  { %vm126_vm3 = vcmp.eq.f32.partialorder %v125_v53, inf }
  0xee   :  { %v127_v55 = vsel %vm126_vm3, 3.4028235e+38, %v125_v53 }
  0xef   :  { %vm128_vm4 = vcmp.eq.f32.partialorder %v127_v55, -inf }
  0xf0   :  { %v129_v56 = vsel %vm128_vm4, -3.4028235e+38, %v127_v55 }
  0xf1   :  { %v134_v57 = vrot.slane %v129_v56, %v133_v54 }
  0xf3   :  { %149 = vst.msk [vmem:[#allocation8] sm:$0xff] %vm148_vm5, %v134_v57 }
  0xf4   :  { %249 = shalt.err (!%p246_p5)
}
  0xf5   :  { %159 = dma.vmem_to_hbm [thread:$0]  %s157_s2, 128, %s312_s3, [#allocation4]  }
  0xf6   :  { %262 = dma.done.wait [#allocation4], 128  }
  0xf7   :  { %263 = vsyncadd [#allocation4], 4294967168 }
  0xf8   :  { %163 = vsyncpa [#allocation3], 1 }
  0xf9   :  { %164 = vsyncpa [#allocation6], 1 }
  0xfa   :  { %165 = vsyncpa [#allocation4], 1 }

</bundles_post_ra>
